<compile_context>
chip_gen: v5e
topology: v5e:2x2
jax: 0.10.0
libtpu: 0.0.40
codegen_flags: <defaults>
</compile_context>

<pallas_src>
import jax
import jax.numpy as jnp
from jax.experimental import pallas as pl
from jax.experimental.pallas import tpu as pltpu


def _round_up(x, m):
    return (x + m - 1) // m * m


def _vmem_budget_bytes():
    # ~3/4 of per-core VMEM, capped at 96 MiB (v5e/v6e: 128 MiB -> 96 MiB,
    # v7x: 64 MiB -> 48 MiB).
    try:
        cap = int(pltpu.get_tpu_info().vmem_capacity_bytes)
    except Exception:
        cap = 64 * 1024 * 1024  # conservative fallback (v7x per-TensorCore)
    return min(cap * 3 // 4, 96 * 1024 * 1024)


def _pick_tiles(T, H, Ip, token_tile, inter_tile):
    """Pick (token_tile tm, intermediate tile ti) for this generation's VMEM."""
    budget = _vmem_budget_bytes()

    # Token tile: multiple of 16 (bf16 packs 16 rows per sublane tile).
    tm = max(16, _round_up(min(token_tile, T), 16))
    # v7x megacore: make sure the "parallel" token axis has >= 2 iterations.
    if -(-T // tm) < 2 and T > 16:
        tm = _round_up(-(-T // 2), 16)

    # Intermediate tile: multiple of 128 that divides Ip (Ip is 128-aligned).
    ti = max(128, min(_round_up(inter_tile, 128), Ip))
    while Ip % ti != 0:
        ti -= 128

    def footprint(tm_, ti_):
        x_b = 2 * (tm_ * H * 2)            # bf16 x, double-buffered
        o_b = 2 * (tm_ * H * 4)            # f32 output block, double-buffered
        w_b = 2 * (tm_ * 4)                # combine-weight column
        wgt = 2 * 3 * (H * ti_ * 2)        # gate/up/down bf16, 2 buffers each
        return x_b + o_b + w_b + wgt

    # Shrink ti first (weight reuse per byte is tm-driven), then tm.
    while footprint(tm, ti) > budget and ti > 128:
        ti -= 128
        while Ip % ti != 0:
            ti -= 128
    while footprint(tm, ti) > budget and tm > 16:
        tm = max(16, _round_up(tm // 2, 16))
    return tm, ti


# ---------------------------------------------------------------------------
# One-time weight packing (hoisted out of the forward).
# ---------------------------------------------------------------------------
def pack_moe_params(params):
    gw, uw, dw = params["gate_w"], params["up_w"], params["down_w"]
    E, H, I = gw.shape
    Ip = _round_up(I, 128)
    if Ip != I:  # zero-padded I columns/rows contribute exactly 0
        gw = jnp.pad(gw, ((0, 0), (0, 0), (0, Ip - I)))
        uw = jnp.pad(uw, ((0, 0), (0, 0), (0, Ip - I)))
        dw = jnp.pad(dw, ((0, 0), (0, Ip - I), (0, 0)))

    rw = params["router_w"]
    R = rw.shape[1]
    Rp = _round_up(max(R, 1), 128)
    rb = params["routing_bias"].astype(jnp.float32)
    if Rp != R:
        rw = jnp.pad(rw, ((0, 0), (0, Rp - R)))
        rb = jnp.pad(rb, (0, Rp - R))

    return {
        "gate_w": gw.astype(jnp.bfloat16),
        "up_w": uw.astype(jnp.bfloat16),
        "down_w": dw.astype(jnp.bfloat16),
        "router_w": rw.astype(jnp.bfloat16),
        "routing_bias": rb.reshape(1, Rp),
        "num_shared": params["num_shared"],
        "num_routed": R,
        "inter_padded": Ip,
    }


# ---------------------------------------------------------------------------
# Router kernel: sigmoid(x @ W + b), tiled over token rows, lane-padded R.
# bf16 inputs, f32 MXU accumulation.
# ---------------------------------------------------------------------------
def router_kernel(x_ref, rw_ref, rb_ref, o_ref):
    logits = jnp.dot(x_ref[...], rw_ref[...], preferred_element_type=jnp.float32)
    o_ref[...] = jax.nn.sigmoid(logits + rb_ref[...])


# ---------------------------------------------------------------------------
# Fused MoE kernel.
# grid = (token_tiles, E, I_tiles); expert + I axes accumulate directly into
# the VMEM-resident f32 output block (its block index is constant across both).
# Scalar-prefetch (flattened [nt * E] int32 in SMEM):
#   cnt_ref  : #tokens in tile i with nonzero combine weight for expert e
#   fidx_ref : expert whose weights to fetch at (i, e) -- e when active, else
#              the previously fetched expert (weight-DMA dedup on skip).
# ---------------------------------------------------------------------------
def moe_kernel(cnt_ref, fidx_ref, x_ref, w_ref, g_ref, u_ref, d_ref, o_ref):
    i = pl.program_id(0)
    e = pl.program_id(1)
    k = pl.program_id(2)
    n_e = pl.num_programs(1)

    @pl.when(jnp.logical_and(e == 0, k == 0))
    def _init():
        o_ref[...] = jnp.zeros_like(o_ref)

    @pl.when(cnt_ref[i * n_e + e] > 0)
    def _compute():
        x = x_ref[...]                                                   # (tm, H) bf16
        g = jnp.dot(x, g_ref[0], preferred_element_type=jnp.float32)     # (tm, ti) f32
        u = jnp.dot(x, u_ref[0], preferred_element_type=jnp.float32)     # (tm, ti) f32
        # SiLU(g)*u with the combine weight folded in BEFORE the bf16 cast:
        # scales a (tm, ti) tensor instead of (tm, H).
        h = (g * jax.nn.sigmoid(g) * u) * w_ref[0]                       # (tm, ti) f32
        o_ref[...] += jnp.dot(h.astype(jnp.bfloat16), d_ref[0],
                              preferred_element_type=jnp.float32)        # (tm, H) f32


# ---------------------------------------------------------------------------
# Wrapper
# ---------------------------------------------------------------------------
def deepseek_moe_forward(x, packed, top_k_experts, token_tile=512, inter_tile=512):
    batch, seq_len, H = x.shape
    T = batch * seq_len

    E = packed["gate_w"].shape[0]
    S = packed["num_shared"]
    R = packed["num_routed"]
    Ip = packed["inter_padded"]
    Rp = packed["router_w"].shape[1]

    tm, ti = _pick_tiles(T, H, Ip, token_tile, inter_tile)
    T_pad = _round_up(T, tm)
    nt = T_pad // tm
    nI = Ip // ti

    xb = x.reshape(T, H).astype(jnp.bfloat16)
    if T_pad != T:
        xb = jnp.pad(xb, ((0, T_pad - T), (0, 0)))

    # --- router: sigmoid(x @ W + b) in Pallas ------------------------------
    probs = pl.pallas_call(
        router_kernel,
        out_shape=jax.ShapeDtypeStruct((T_pad, Rp), jnp.float32),
        grid=(nt,),
        in_specs=[
            pl.BlockSpec((tm, H), lambda i: (i, 0)),
            pl.BlockSpec((H, Rp), lambda i: (0, 0)),
            pl.BlockSpec((1, Rp), lambda i: (0, 0)),
        ],
        out_specs=pl.BlockSpec((tm, Rp), lambda i: (i, 0)),
        compiler_params=pltpu.CompilerParams(dimension_semantics=("parallel",)),
    )(xb, packed["router_w"], packed["routing_bias"])
    probs = probs[:T, :R]

    # --- top-k routing glue (plain JAX) -------------------------------------
    # TODO(synk): top-k selection + dense scatter have no clean Pallas TPU
    #             equivalent; kept as cheap JAX glue.
    scores, idx = jax.lax.top_k(probs, top_k_experts)                 # (T, K)
    scores = scores / jnp.sum(scores, axis=-1, keepdims=True)
    routed_w = jnp.zeros((T, R), jnp.float32).at[
        jnp.arange(T)[:, None], idx].add(scores)                      # (T, R)

    shared_val = 1.0 if S <= 1 else 1.0 / S
    shared_w = jnp.full((T, S), shared_val, jnp.float32)
    comb_w = jnp.concatenate([shared_w, routed_w], axis=1)            # (T, E)
    if T_pad != T:
        comb_w = jnp.pad(comb_w, ((0, T_pad - T), (0, 0)))            # pad rows -> 0

    # Per-(tile, expert) active counts + weight-fetch dedup indices (SMEM).
    active = comb_w > 0.0
    counts = active.reshape(nt, tm, E).sum(axis=1).astype(jnp.int32)  # (nt, E)
    eidx = jnp.arange(E, dtype=jnp.int32)[None, :]
    last_active = jax.lax.cummax(
        jnp.where(counts > 0, eidx, jnp.int32(-1)), axis=1)
    fetch_idx = jnp.maximum(last_active, 0).astype(jnp.int32)         # (nt, E)
    counts_flat = counts.reshape(-1)
    fetch_flat = fetch_idx.reshape(-1)

    # Expert-major combine weights: kernel reads its (tm, 1) column directly.
    comb_t = comb_w.T[:, :, None]                                     # (E, T_pad, 1)

    def x_map(i, e, k, cnt, fidx):
        return (i, 0)

    def w_map(i, e, k, cnt, fidx):
        return (e, i, 0)

    def gu_map(i, e, k, cnt, fidx):
        # For skipped experts, pin to the last fetched expert's LAST I-chunk so
        # the block index is unchanged across the whole inner loop (DMA dedup).
        s = i * E + e
        return (fidx[s], 0, jnp.where(cnt[s] > 0, k, nI - 1))

    def d_map(i, e, k, cnt, fidx):
        s = i * E + e
        return (fidx[s], jnp.where(cnt[s] > 0, k, nI - 1), 0)

    def o_map(i, e, k, cnt, fidx):
        return (i, 0)

    grid_spec = pltpu.PrefetchScalarGridSpec(
        num_scalar_prefetch=2,
        grid=(nt, E, nI),
        in_specs=[
            pl.BlockSpec((tm, H), x_map),
            pl.BlockSpec((1, tm, 1), w_map),
            pl.BlockSpec((1, H, ti), gu_map),      # gate column chunk
            pl.BlockSpec((1, H, ti), gu_map),      # up column chunk
            pl.BlockSpec((1, ti, H), d_map),       # down row chunk
        ],
        out_specs=pl.BlockSpec((tm, H), o_map),
    )

    out = pl.pallas_call(
        moe_kernel,
        out_shape=jax.ShapeDtypeStruct((T_pad, H), jnp.float32),
        grid_spec=grid_spec,
        compiler_params=pltpu.CompilerParams(
            dimension_semantics=("parallel", "arbitrary", "arbitrary"),
            vmem_limit_bytes=_vmem_budget_bytes()),
    )(counts_flat, fetch_flat, xb, comb_t,
      packed["gate_w"], packed["up_w"], packed["down_w"])

    return out[:T].reshape(batch, seq_len, H)


# ---------------------------------------------------------------------------
# Pure-JAX reference (mirrors the PyTorch forward and the kernel's bf16 policy:
# bf16 x / weights, f32 accumulation, combine weight folded before the bf16
# cast of the hidden activations).
# ---------------------------------------------------------------------------
def _mlp_ref(x, gw, uw, dw, w):
    g = x @ gw
    u = x @ uw
    h = ((g * jax.nn.sigmoid(g) * u) * w).astype(jnp.bfloat16).astype(jnp.float32)
    return h @ dw


def deepseek_moe_ref(x, params, top_k_experts):
    b, s, H = x.shape
    T = b * s
    S = params["num_shared"]
    R = params["router_w"].shape[1]

    xq = x.reshape(T, H).astype(jnp.bfloat16).astype(jnp.float32)
    gw = params["gate_w"].astype(jnp.bfloat16).astype(jnp.float32)
    uw = params["up_w"].astype(jnp.bfloat16).astype(jnp.float32)
    dw = params["down_w"].astype(jnp.bfloat16).astype(jnp.float32)
    rw = params["router_w"].astype(jnp.bfloat16).astype(jnp.float32)

    shared_val = 1.0 if S <= 1 else 1.0 / S
    shared = sum(_mlp_ref(xq, gw[i], uw[i], dw[i], shared_val) for i in range(S))

    logits = xq @ rw + params["routing_bias"].astype(jnp.float32)
    probs = jax.nn.sigmoid(logits)
    scores, idx = jax.lax.top_k(probs, top_k_experts)
    scores = scores / jnp.sum(scores, axis=-1, keepdims=True)
    dense = jnp.zeros((T, R), jnp.float32).at[
        jnp.arange(T)[:, None], idx].add(scores)

    routed = sum(_mlp_ref(xq, gw[S + i], uw[S + i], dw[S + i], dense[:, i:i + 1])
                 for i in range(R))
    return (shared + routed).reshape(b, s, H)


# ---------------------------------------------------------------------------
if __name__ == "__main__":
    # Small config consistent with the module's forward.
    batch, seq_len = 2, 16
    hidden_size, intermediate_size = 32, 64
    num_experts, num_shared_experts, top_k_experts = 8, 1, 2
    num_routed = num_experts - num_shared_experts          # 7
    E = num_shared_experts + num_routed                    # 8 expert MLPs total

    key = jax.random.PRNGKey(0)
    k_gate, k_up, k_down, k_router, k_x = jax.random.split(key, 5)

    params = {
        "gate_w": jax.random.normal(k_gate, (E, hidden_size, intermediate_size),
                                    jnp.float32) / jnp.sqrt(hidden_size),
        "up_w": jax.random.normal(k_up, (E, hidden_size, intermediate_size),
                                  jnp.float32) / jnp.sqrt(hidden_size),
        "down_w": jax.random.normal(k_down, (E, intermediate_size, hidden_size),
                                    jnp.float32) / jnp.sqrt(intermediate_size),
        "router_w": jax.random.normal(k_router, (hidden_size, num_routed),
                                      jnp.float32) / jnp.sqrt(hidden_size),
        "routing_bias": jnp.zeros((num_routed,), jnp.float32),
        "num_shared": num_shared_experts,
    }

    x = jax.random.normal(k_x, (batch, seq_len, hidden_size), jnp.float32)

    # One-time weight packing (hoisted out of the per-call forward).
    packed = pack_moe_params(params)

    # token_tile=16 exercises multiple token tiles and the expert-skip path at
    # this tiny T; the defaults (512 / 512) are the production-oriented tiles.
    out = deepseek_moe_forward(x, packed, top_k_experts, token_tile=16)
    out = jax.block_until_ready(out)

    ref = deepseek_moe_ref(x, params, top_k_experts)
    assert out.shape == (batch, seq_len, hidden_size)
    assert jnp.allclose(out, ref, rtol=1e-2, atol=1e-2), "mismatch vs reference"

    print("KERNEL_OK")
</pallas_src>

<mosaic_0001>
module attributes {stable_mosaic.version = 11 : i64} {
  func.func @router_kernel(%arg0: i32, %arg1: memref<16x32xbf16, #tpu.memory_space<vmem>>, %arg2: memref<32x128xbf16, #tpu.memory_space<vmem>>, %arg3: memref<1x128xf32, #tpu.memory_space<vmem>>, %arg4: memref<16x128xf32, #tpu.memory_space<vmem>>) attributes {dimension_semantics = [#tpu.dimension_semantics<parallel>], iteration_bounds = array<i64: 2>, scalar_prefetch = 0 : i64, scratch_operands = 0 : i64, tpu.core_type = #tpu.core_type<tc>, window_params = [{transform_indices = @transform_0, window_bounds = array<i64: 16, 32>}, {pipeline_mode = #tpu.pipeline_mode<synchronous>, transform_indices = @transform_1, window_bounds = array<i64: 32, 128>}, {pipeline_mode = #tpu.pipeline_mode<synchronous>, transform_indices = @transform_2, window_bounds = array<i64: 1, 128>}, {transform_indices = @transform_3, window_bounds = array<i64: 16, 128>}]} {
    %c0 = arith.constant 0 : index
    %c0_0 = arith.constant 0 : index
    %0 = vector.load %arg1[%c0, %c0_0] : memref<16x32xbf16, #tpu.memory_space<vmem>>, vector<16x32xbf16>
    %c0_1 = arith.constant 0 : index
    %c0_2 = arith.constant 0 : index
    %1 = vector.load %arg2[%c0_1, %c0_2] : memref<32x128xbf16, #tpu.memory_space<vmem>>, vector<32x128xbf16>
    %cst = arith.constant dense<0.000000e+00> : vector<16x128xf32>
    %2 = tpu.matmul %0, %1, %cst {dimension_numbers = #tpu.dot_dimension_numbers<[1], [0], [0], [1], [0, 0, 1, 1], [], []>} : vector<16x32xbf16>, vector<32x128xbf16>, vector<16x128xf32> -> vector<16x128xf32>
    %c0_3 = arith.constant 0 : index
    %c0_4 = arith.constant 0 : index
    %3 = vector.load %arg3[%c0_3, %c0_4] : memref<1x128xf32, #tpu.memory_space<vmem>>, vector<1x128xf32>
    %4 = vector.broadcast %3 : vector<1x128xf32> to vector<16x128xf32>
    %5 = arith.addf %2, %4 : vector<16x128xf32>
    %6 = arith.negf %5 : vector<16x128xf32>
    %7 = math.exp %6 : vector<16x128xf32>
    %cst_5 = arith.constant 1.000000e+00 : f32
    %8 = vector.broadcast %cst_5 : f32 to vector<16x128xf32>
    %9 = arith.addf %8, %7 : vector<16x128xf32>
    %10 = arith.divf %8, %9 : vector<16x128xf32>
    %c0_6 = arith.constant 0 : index
    %c0_7 = arith.constant 0 : index
    %11 = vector.load %arg4[%c0_6, %c0_7] : memref<16x128xf32, #tpu.memory_space<vmem>>, vector<16x128xf32>
    tpu.vector_store %arg4[%c0_6, %c0_7], %10 {strides = array<i32>} : memref<16x128xf32, #tpu.memory_space<vmem>>, vector<16x128xf32>,
    return
  }
  func.func @transform_0(%arg0: i32) -> (i32, i32) {
    %c0_i32 = arith.constant 0 : i32
    %c0_i32_0 = arith.constant 0 : i32
    return %arg0, %c0_i32 : i32, i32
  }
  func.func @transform_1(%arg0: i32) -> (i32, i32) {
    %c0_i32 = arith.constant 0 : i32
    %c0_i32_0 = arith.constant 0 : i32
    %c0_i32_1 = arith.constant 0 : i32
    return %c0_i32, %c0_i32_0 : i32, i32
  }
  func.func @transform_2(%arg0: i32) -> (i32, i32) {
    %c0_i32 = arith.constant 0 : i32
    %c0_i32_0 = arith.constant 0 : i32
    %c0_i32_1 = arith.constant 0 : i32
    return %c0_i32, %c0_i32_0 : i32, i32
  }
  func.func @transform_3(%arg0: i32) -> (i32, i32) {
    %c0_i32 = arith.constant 0 : i32
    %c0_i32_0 = arith.constant 0 : i32
    return %arg0, %c0_i32 : i32, i32
  }
}

</mosaic_0001>

<bundles_post_ra>
// kernel: tpu_custom_call.1
= control target key start
LH: loop header
LB: loop body
LE: loop exit
PB: predicated region body
PF: predicated region fallthrough
CT: control target
= control target key end

     0   :  { %8 = vsyncpa [#allocation3], 0  ;;  %s806_s0 = inlined_call_operand.hbm [shape: bf16[32,32], index: 0, kind: input, shape index: {}]   ;;  %s807_s1 = inlined_call_operand.hbm [shape: bf16[32,128], index: 1, kind: input, shape index: {}]   ;;  %s808_s2 = inlined_call_operand.vmem [shape: f32[1,128], index: 2, kind: input, shape index: {}]   ;;  %s809_s3 = inlined_call_operand.hbm [shape: f32[32,128], index: 3, kind: output, shape index: {}]  }
   0x1   :  { %10 = vsyncpa [#allocation3 + $0x1], 0 }
   0x2   :  { %11 = vsyncpa [#allocation6], 0 }
   0x3   :  { %12 = vsyncpa [#allocation4], 0 }
   0x4   :  { %14 = vsyncpa [#allocation4 + $0x1], 0  ;;  %s658_s12 = smov 0   ;;  %s660_s13 = smov 0  }
   0x5   :  { %s662_s14 = smov 0   ;;  %s664_s15 = smov 0  }
   0x6 LB: > { %s679_s16 = sadd.s32 4294967295, %s631_s15   ;;  %s395_s17 = sadd.s32 4294967294, %s631_s15   ;;  %s631_s15 = sphi %s664_s15, %s819_s15   ;;  %s627_s14 = sphi %s662_s14, %s818_s14   ;;  %s623_s13 = sphi %s660_s13, %s817_s13   ;;  %s619_s12 = sphi %s658_s12, %s816_s12  }
   0x7   : > { %p40_p0 = scmp.ne.s32.totalorder %s623_s13, %s619_s12  ;;  %p41_p1 = scmp.eq.s32.totalorder %s679_s16, 0 }
   0x8   : > { %p106_p2 = scmp.eq.s32.totalorder %s679_s16, 1  ;;  %p112_p3 = scmp.eq.s32.totalorder %s395_s17, 1 }
   0x9   : > { %p688_p4 = por %p41_p1, %p40_p0  ;;  %p396_p5 = scmp.ge.s32.totalorder %s631_s15, 1 }
   0xa   : > { %p693_p6 = por %p112_p3, %p40_p0  ;;  %p119_p7 = scmp.lt.s32.totalorder %s631_s15, 3 }
   0xb   : > { %s130_s22 = sshll.u32 %s807_s1, 4  ;;  %s633_s24 = smov [#allocation5]   ;;  %s131_s22 = int_to_ptr.hbm [resolvable:$true] %s130_s22 }
   0xc   : > { %p701_p8 = pnand %p396_p5, %p119_p7  ;;  %s132_s25 = sshll.u32 %s633_s24, 4  ;;  %s133_s25 = int_to_ptr.vmem [resolvable:$true] %s132_s25 }
   0xd   : > { %s711_s26 = sadd.s32 1, %s631_s15   ;;  %s634_s27 = smov 64  }
   0xe   : > { %p439_p9 = pneg %p701_p8  ;;  %s635_s28 = smov 4  }
   0xf   : > { %s24_s29 = ssub.s32 %s631_s15, %s711_s26  ;;  %s27_s30 = sadd.s32 1, %s627_s14 }
  0x10   : > { %p440_p10 = pnand %p439_p9, %p41_p1  ;;  %p25_p12 = scmp.eq.s32.totalorder %s24_s29, 0 }
  0x11   : > { %p34_p13 = scmp.ne.s32.totalorder %s627_s14, %s623_s13  ;;  %p35_p0 = scmp.eq.s32.totalorder %s631_s15, 0 }
  0x12   : > { %442 = dma.hbm_to_vmem [thread:$0]  (!%p440_p10), %s131_s22, 256, %s133_s25, [#allocation6], %s634_s27, %s634_s27, %s635_s28  }
  0x13   : > { %s723_s4 = scalar_select %p25_p12, %s627_s14, %s27_s30  }
  0x14   : > { %p727_p3 = por %p106_p2, %p34_p13  ;;  %p452_p5 = scmp.lt.s32.totalorder %s631_s15, 2 }
  0x15   : > { %s149_s6 = sand.u32 1, %s627_s14   ;;  %s426_s7 = sshll.u32 %s631_s15, 3 }
  0x16   : > { %p36_p7 = por %p35_p0, %p34_p13  ;;  %s399_s8 = sshll.u32 %s149_s6, 3 }
  0x17   : > { %s158_s11 = scalar_lea.hbm %s806_s0, %s426_s7  ;;  %s153_s20 = scalar_lea.vmem [#allocation2], %s399_s8 }
  0x18   : > { %s159_s17 = sshll.u32 %s158_s11, 4  ;;  %s161_s21 = sshll.u32 %s153_s20, 4  ;;  %s160_s17 = int_to_ptr.hbm [resolvable:$true] %s159_s17  ;;  %s162_s21 = int_to_ptr.vmem [resolvable:$true] %s161_s21 }
  0x19   : > { %p737_p9 = pnand %p452_p5, %p36_p7  ;;  %s150_s24 = scalar_lea.sflag [#allocation3], %s149_s6 }
  0x1a   : > { %s531_s25 = sshra.s32 %s160_s17, 4  ;;  %s538_s8 = scalar_lea.hbm %s806_s0, 16  ;;  %s532_s25 = int_to_ptr.hbm [resolvable:$true] %s531_s25 }
  0x1b   : > { %s533_s29 = scalar_lea.hbm %s532_s25, 8  ;;  %p535_p10 = pneg %p737_p9 }
  0x1c   : > { %p534_p2 = scmp.ne.s32.totalorder %s532_s25, %s533_s29  ;;  %p539_p0 = scmp.lt.s32.totalorder %s532_s25, %s806_s0 }
  0x1d   : > { %p540_p5 = scmp.lt.s32.totalorder %s538_s8, %s533_s29 }
  0x1e   : > { %p536_p12 = pnand %p535_p10, %p534_p2 }
  0x1f   : > { %p541_p7 = por %p540_p5, %p539_p0 }
  0x20   : > { %p537_p13 = pneg %p536_p12 }
  0x22   : > { %p542_p11 = pnand %p541_p7, %p537_p13 }
  0x24   : > { %545 = shalt.err (!%p542_p11)
}
  0x25   : > { %446 = dma.hbm_to_vmem [thread:$0]  (!%p737_p9), %s160_s17, 128, %s162_s21, %s150_s24, %s634_s27, %s634_s27, %s635_s28  }
  0x26   : > { %173 = sbr.rel (%p701_p8) target bundleno = 222 (0xde), region = 32  ;;  %s757_s6 = sand.u32 (!%p701_p8), 1, %s623_s13  }
  0x27   : > { %s403_s11 = sshll.u32 (!%p701_p8), %s757_s6, 3  ;;  %s176_s20 = scalar_lea.sflag (!%p701_p8), [#allocation3], %s757_s6 }
  0x28   : > { %s179_s25 = scalar_lea.vmem (!%p701_p8), [#allocation2], %s403_s11 }
  0x2b   : > { %606 = dma.done.wait (%p688_p4), %s176_s20, 128  }
  0x2c   : > { %608 = vsyncadd (%p688_p4), %s176_s20, 4294967168 }
  0x2d   : > { %610 = dma.done.wait (%p41_p1), [#allocation6], 256  }
  0x2e   : > { %612 = vsyncadd (%p41_p1), [#allocation6], 4294967040  ;;  %v429_v0 = vld [vmem:[#allocation5 + $0x8] sm:$0xff]  ;;  %v428_v1 = vld [vmem:[#allocation5] sm:$0xff]  ;;  %vm238_vm0 = vcmask 261120   ;;  %s405_s18 = sshll.u32 %s757_s6, 4 }
  0x2f   : > { %248 = vmatpush.bf16.msra.mxu0 %v429_v0  ;;  %v427_v2 = vld [vmem:[%s179_s25] sm:$0xff]  ;;  %s430_s28 = sshll.u32 %s679_s16, 4  ;;  %s207_s24 = scalar_lea.vmem [#allocation7], %s405_s18 }
  0x30   : > { %v492_v3 = vld [vmem:[%s808_s2] ss:$0 sm:$0xff]  ;;  %s308_s22 = scalar_lea.hbm %s809_s3, %s430_s28  ;;  %s309_s16 = sshll.u32 %s207_s24, 4  ;;  %s310_s16 = int_to_ptr.vmem [resolvable:$true] %s309_s16 }
  0x31   : > { %s311_s29 = sshll.u32 %s308_s22, 4  ;;  %s297_s30 = scalar_lea.sflag [#allocation4], %s757_s6  ;;  %s312_s29 = int_to_ptr.hbm [resolvable:$true] %s311_s29 }
  0x32   : > { %s575_s7 = sshra.s32 %s312_s29, 4  ;;  %s581_s11 = scalar_lea.hbm %s809_s3, 32  ;;  %s576_s7 = int_to_ptr.hbm [resolvable:$true] %s575_s7 }
  0x33   : > { %249 = vmatpush.bf16.msra.mxu0 %v428_v1  ;;  %s577_s8 = scalar_lea.hbm %s576_s7, 16  ;;  %p582_p11 = scmp.lt.s32.totalorder %s576_s7, %s809_s3 }
  0x34   : > { %p578_p1 = scmp.ne.s32.totalorder %s576_s7, %s577_s8  ;;  %p583_p9 = scmp.lt.s32.totalorder %s581_s11, %s577_s8 }
  0x36   : > { %418 = vmatmul.msk.bf16.vlgmr.msra.gmra.mxu0 %vm238_vm0, %v427_v2  ;;  %p579_p4 = pnand %p578_p1, %p727_p3  ;;  %p584_p2 = por %p583_p9, %p582_p11 }
  0x38   : > { %p580_p8 = pneg %p579_p4 }
  0x3a   : > { %p585_p10 = pnand %p584_p2, %p580_p8 }
  0xb3   : > { %v251_v4 = vpop.f32.mrf.mxu0 }
  0xb4   : > { %v252_v5 = vadd.f32 %v492_v3, %v251_v4 }
  0xb6   : > { %v419_v6 = vmul.f32 -1.442695, %v252_v5 }
  0xb8   : > { %493 = vpow2.f32 %v419_v6 }
  0xbb   : > { %v253_v7 = vpop.f32.mrf.mxu0 }
  0xbc   : > { %v254_v8 = vadd.f32 %v492_v3, %v253_v7 }
  0xbe   : > { %v494_v9 = vpop.eup %493  ;;  %v420_v10 = vmul.f32 -1.442695, %v254_v8 }
  0xbf   : > { %v262_v11 = vadd.f32 1.0, %v494_v9 }
  0xc0   : > { %495 = vpow2.f32 %v420_v10 }
  0xc1   : > { %497 = vrcp.f32 %v262_v11  ;;  %v275_v17 = vand.u32 2147483648, %v262_v11  ;;  %v273_v19 = vand.u32 2147483647, %v262_v11  ;;  %vm269_vm2 = vweird.f32 %v262_v11 }
  0xc3   : > { %v276_v22 = vor.u32 1.1754944e-38, %v275_v17  ;;  %vm274_vm4 = vcmp.eq.f32.partialorder %v273_v19, 8.507059e+37 }
  0xc6   : > { %v496_v12 = vpop.eup %495 }
  0xc7   : > { %v498_v13 = vpop.eup %497  ;;  %v263_v14 = vadd.f32 1.0, %v496_v12 }
  0xc8   : > { %v265_v15 = vmul.f32 %v498_v13, %v262_v11  ;;  %vm270_vm1 = vweird.f32 %v498_v13 }
  0xc9   : > { %499 = vrcp.f32 %v263_v14  ;;  %vm271_vm3 = vmor %vm269_vm2, %vm270_vm1  ;;  %v290_v27 = vand.u32 2147483648, %v263_v14  ;;  %v288_v29 = vand.u32 2147483647, %v263_v14  ;;  %vm284_vm6 = vweird.f32 %v263_v14 }
  0xca   : > { %v266_v16 = vsub.f32 1.0, %v265_v15 }
  0xcb   : > { %v291_v31 = vor.u32 1.1754944e-38, %v290_v27  ;;  %vm289_vm8 = vcmp.eq.f32.partialorder %v288_v29, 8.507059e+37 }
  0xcc   : > { %v267_v18 = vmul.f32 %v498_v13, %v266_v16 }
  0xce   : > { %v268_v20 = vadd.f32 %v498_v13, %v267_v18 }
  0xcf   : > { %v500_v21 = vpop.eup %499 }
  0xd0   : > { %v272_v23 = vsel %vm271_vm3, %v498_v13, %v268_v20  ;;  %v280_v24 = vmul.f32 %v500_v21, %v263_v14  ;;  %vm285_vm5 = vweird.f32 %v500_v21 }
  0xd1   : > { %v277_v25 = vsel %vm274_vm4, %v276_v22, %v272_v23  ;;  %vm286_vm7 = vmor %vm284_vm6, %vm285_vm5 }
  0xd2   : > { %v281_v26 = vsub.f32 1.0, %v280_v24  ;;  %294 = vst [vmem:[%s207_s24] sm:$0xff] %v277_v25 }
  0xd4   : > { %v282_v28 = vmul.f32 %v500_v21, %v281_v26 }
  0xd6   : > { %v283_v30 = vadd.f32 %v500_v21, %v282_v28 }
  0xd8   : > { %v287_v32 = vsel %vm286_vm7, %v500_v21, %v283_v30 }
  0xd9   : > { %v292_v33 = vsel %vm289_vm8, %v291_v31, %v287_v32 }
  0xda   : > { %295 = vst [vmem:[%s207_s24 + $0x8] sm:$0xff] %v292_v33 }
  0xdb   : > { %588 = shalt.err (!%p585_p10)
}
  0xdc   : > { %s636_s6 = smov 128   ;;  %s637_s23 = smov 8  }
  0xdd   : > { %437 = dma.vmem_to_hbm [thread:$0]  (%p727_p3), %s310_s16, 256, %s312_s29, %s297_s30, %s636_s6, %s636_s6, %s637_s23  }
  0xde PF: > { %s326_s27 = sand.u32 1, %s619_s12   ;;  %p815_p12 = scmp.ge.s32.totalorder %s631_s15, 2 }
  0xdf   : > { %s327_s18 = scalar_lea.sflag [#allocation4], %s326_s27 }
  0xe0   : > { %p448_p13 = pnand %p815_p12, %p693_p6 }
  0xe2   : > { %p449_p0 = pneg %p448_p13 }
  0xe4   : > { %614 = dma.done.wait (%p449_p0), %s327_s18, 256  }
  0xe5   : > { %616 = vsyncadd (%p449_p0), %s327_s18, 4294967040  ;;  %p17_p5 = scmp.ge.s32.totalorder %s711_s26, 4   ;;  %s816_s12 = smov %s623_s13 }
  0xe6   : > { %s817_s13 = smov %s627_s14  ;;  %s818_s14 = smov %s723_s4 }
  0xe7   : > { %s819_s15 = smov %s711_s26  ;;  %19 = sbr.rel (!%p17_p5) target bundleno = 6 (0x6), region = 81 }
  0xec   :  { %333 = vsyncpa [#allocation3], 1 }
  0xed   :  { %335 = vsyncpa [#allocation3 + $0x1], 1 }
  0xee   :  { %336 = vsyncpa [#allocation6], 1 }
  0xef   :  { %337 = vsyncpa [#allocation4], 1 }
  0xf0   :  { %339 = vsyncpa [#allocation4 + $0x1], 1 }

</bundles_post_ra>
